<compile_context>
chip_gen: v5e
topology: v5e:2x2
jax: 0.10.0
libtpu: 0.0.40
codegen_flags: <defaults>
</compile_context>

<pallas_src>
import jax
import jax.numpy as jnp
import numpy as np
from jax.experimental import pallas as pl
from jax.experimental.pallas import tpu as pltpu


_MULTI_DMA_MIN_BYTES = 8 * 1024 * 1024   # above this, keep several DMAs in flight
_MAX_DMA_CHUNKS = 4                      # 2-4 concurrent DMAs saturate HBM


def _chunk_bounds(leading: int, n_chunks: int):
    """Split range(leading) into n_chunks contiguous (start, size) pieces (static)."""
    n_chunks = max(1, min(n_chunks, leading))
    base, rem = divmod(leading, n_chunks)
    bounds, start = [], 0
    for i in range(n_chunks):
        size = base + (1 if i < rem else 0)
        bounds.append((start, size))
        start += size
    return tuple(bounds)


def _make_memcpy_kernel(chunk_bounds):
    """HBM->HBM copy: one async DMA per static (start, rows) chunk, all in flight."""

    def kernel(src_ref, dst_ref, sems):
        copies = [
            pltpu.make_async_copy(
                src_ref.at[pl.ds(start, rows)],
                dst_ref.at[pl.ds(start, rows)],
                sems.at[i],
            )
            for i, (start, rows) in enumerate(chunk_bounds)
        ]
        for c in copies:   # issue all DMAs (concurrent)
            c.start()
        for c in copies:   # then drain
            c.wait()

    return kernel


def pallas_identity_copy(t: jax.Array) -> jax.Array:
    """Fresh copy of `t` via direct HBM->HBM DMA (no VMEM staging, no grid)."""
    x = t.reshape(1) if t.ndim == 0 else t
    nbytes = int(x.size) * int(x.dtype.itemsize)

    n_chunks = _MAX_DMA_CHUNKS if nbytes >= _MULTI_DMA_MIN_BYTES else 1
    bounds = _chunk_bounds(x.shape[0], n_chunks)

    out = pl.pallas_call(
        _make_memcpy_kernel(bounds),
        out_shape=jax.ShapeDtypeStruct(x.shape, x.dtype),
        in_specs=[pl.BlockSpec(memory_space=pl.ANY)],
        out_specs=pl.BlockSpec(memory_space=pl.ANY),
        scratch_shapes=[pltpu.SemaphoreType.DMA((len(bounds),))],
        cost_estimate=pl.CostEstimate(
            flops=0, transcendentals=0, bytes_accessed=2 * nbytes),
    )(x)
    return out.reshape(t.shape)


class TensorModule:
    """JAX/Pallas port of the PyTorch TensorModule (buffer passthrough)."""

    def __init__(self, tensor: jax.Array):
        self.t = tensor

    def forward(self, *, copy: bool = False) -> jax.Array:
        if not copy:
            # `return self.t`: true no-op passthrough — no kernel, no HBM traffic.
            return self.t
        # Caller explicitly wants an independent buffer: Pallas HBM->HBM DMA copy.
        return pallas_identity_copy(self.t)

    __call__ = forward


if __name__ == "__main__":
    key = jax.random.PRNGKey(0)
    k_small, k_big = jax.random.split(key)

    # Small buffer (matches the original test shape) -> single-DMA copy path.
    small = jax.random.normal(k_small, (16, 256), dtype=jnp.float32)
    # Larger buffer (16 MiB) -> multi-chunk concurrent-DMA copy path.
    big = jax.random.normal(k_big, (4096, 1024), dtype=jnp.float32)

    ok = True
    for buf in (small, big):
        reference = np.asarray(buf)
        module = TensorModule(buf)

        out_pass = jax.block_until_ready(module())           # passthrough (no-op)
        out_copy = jax.block_until_ready(module(copy=True))  # Pallas DMA copy

        ok &= out_pass.shape == reference.shape
        ok &= out_copy.shape == reference.shape
        ok &= out_copy.dtype == buf.dtype
        ok &= bool(np.array_equal(np.asarray(out_pass), reference))
        ok &= bool(np.array_equal(np.asarray(out_copy), reference))

    if ok:
        print("KERNEL_OK")
</pallas_src>

<mosaic_0001>
module attributes {stable_mosaic.version = 11 : i64} {
  func.func @kernel(%arg0: memref<16x256xf32, #tpu.memory_space<any>>, %arg1: memref<16x256xf32, #tpu.memory_space<any>>, %arg2: memref<1x!tpu.dma_semaphore, #tpu.memory_space<semaphore_mem>>) attributes {dimension_semantics = [], scalar_prefetch = 0 : i64, scratch_operands = 1 : i64, tpu.core_type = #tpu.core_type<tc>} {
    %c0_i32 = arith.constant 0 : i32
    %c0_i32_0 = arith.constant 0 : i32
    %c0_i32_1 = arith.constant 0 : i32
    %0 = tpu.memref_slice %arg0[%c0_i32_0, %c0_i32_1] : memref<16x256xf32, #tpu.memory_space<any>> -> memref<16x256xf32, #tpu.memory_space<any>>
    %c0_i32_2 = arith.constant 0 : i32
    %c0_i32_3 = arith.constant 0 : i32
    %1 = tpu.memref_slice %arg1[%c0_i32_2, %c0_i32_3] : memref<16x256xf32, #tpu.memory_space<any>> -> memref<16x256xf32, #tpu.memory_space<any>>
    %2 = tpu.memref_slice %arg2[%c0_i32] : memref<1x!tpu.dma_semaphore, #tpu.memory_space<semaphore_mem>> -> memref<1x!tpu.dma_semaphore, #tpu.memory_space<semaphore_mem>>
    %3 = tpu.memref_squeeze %2 : memref<1x!tpu.dma_semaphore, #tpu.memory_space<semaphore_mem>> -> memref<!tpu.dma_semaphore, #tpu.memory_space<semaphore_mem>>
    tpu.enqueue_dma source(%0 : memref<16x256xf32, #tpu.memory_space<any>>) target(%1 : memref<16x256xf32, #tpu.memory_space<any>>) target_semaphore(%3 : memref<!tpu.dma_semaphore, #tpu.memory_space<semaphore_mem>>)
    %c0_i32_4 = arith.constant 0 : i32
    %c0_i32_5 = arith.constant 0 : i32
    %c0_i32_6 = arith.constant 0 : i32
    %4 = tpu.memref_slice %arg0[%c0_i32_5, %c0_i32_6] : memref<16x256xf32, #tpu.memory_space<any>> -> memref<16x256xf32, #tpu.memory_space<any>>
    %c0_i32_7 = arith.constant 0 : i32
    %c0_i32_8 = arith.constant 0 : i32
    %5 = tpu.memref_slice %arg1[%c0_i32_7, %c0_i32_8] : memref<16x256xf32, #tpu.memory_space<any>> -> memref<16x256xf32, #tpu.memory_space<any>>
    %6 = tpu.memref_slice %arg2[%c0_i32_4] : memref<1x!tpu.dma_semaphore, #tpu.memory_space<semaphore_mem>> -> memref<1x!tpu.dma_semaphore, #tpu.memory_space<semaphore_mem>>
    %7 = tpu.memref_squeeze %6 : memref<1x!tpu.dma_semaphore, #tpu.memory_space<semaphore_mem>> -> memref<!tpu.dma_semaphore, #tpu.memory_space<semaphore_mem>>
    tpu.wait_dma2 semaphore(%7 : memref<!tpu.dma_semaphore, #tpu.memory_space<semaphore_mem>>) src(%4 : memref<16x256xf32, #tpu.memory_space<any>>) dst(%5 : memref<16x256xf32, #tpu.memory_space<any>>)
    return
  }
}

</mosaic_0001>

<bundles_post_ra>
// kernel: tpu_custom_call.1
= control target key start
LH: loop header
LB: loop body
LE: loop exit
PB: predicated region body
PF: predicated region fallthrough
CT: control target
= control target key end

     0   :  { %s33_s12 = smov [#allocation2]   ;;  %s34_s13 = smov [#allocation3]   ;;  %s52_s0 = inlined_call_operand.hbm [shape: f32[16,256], index: 0, kind: input, shape index: {}]   ;;  %s53_s1 = inlined_call_operand.hbm [shape: f32[16,256], index: 1, kind: output, shape index: {}]  }
   0x1   :  { %s10_s8 = sshll.u32 %s52_s0, 4  ;;  %s12_s11 = sshll.u32 %s53_s1, 4  ;;  %s11_s8 = int_to_ptr.hbm [resolvable:$true] %s10_s8  ;;  %s13_s11 = int_to_ptr.hbm [resolvable:$true] %s12_s11 }
   0x2   :  { %s35_s14 = smov 0  }
   0x3   :  { %16 = dma.general %s11_s8, 512, %s13_s11, %s33_s12, %s34_s13, [#allocation4], %s35_s14, 0  }
   0x4   :  { %31 = dma.done.wait [#allocation2], 512 }
   0x5   :  { %32 = vsyncadd [#allocation2], 4294966784 }
   0x6   :  { %21 = vsyncmov [#allocation2] }
   0x9   :  { %s22_s15 = vpop.sfrf %21 }
   0xa   :  { %p27_p0 = scmp.ne.s32.totalorder %s22_s15, 0 }
   0xc   :  { %26 = shalt.err (%p27_p0)  }

</bundles_post_ra>
